<compile_context>
chip_gen: v5e
topology: v5e:2x2
jax: 0.10.0
libtpu: 0.0.40
codegen_flags: <defaults>
</compile_context>

<pallas_src>
import jax
import jax.numpy as jnp
from jax.experimental import pallas as pl
from jax.experimental.pallas import tpu as pltpu

_NEG_BIG = -1.0e30  # finite "minus infinity" for padded label lanes (f32)
_LANE = 128
_SUBLANE = 8


def _round_up(v, m):
    return ((v + m - 1) // m) * m


def _vmem_budget_bytes():
    """Scoped-VMEM budget: ~70% of physical VMEM; 48 MiB fallback (safe on
    v5e/v6e [128 MiB phys] and v7x [64 MiB phys])."""
    try:
        cap = pltpu.get_tpu_info().vmem_capacity_bytes
        return int(cap * 0.7)
    except Exception:
        return 48 * 1024 * 1024


def _logreg_kernel(x_ref, w_ref, b_ref, o_ref, acc_ref):
    # x_ref: (TB, TK)   w_ref: (TK, L_pad)   b_ref: (1, L_pad) f32
    # o_ref: (TB, L_pad) f32                 acc_ref: (TB, L_pad) f32 scratch
    k = pl.program_id(1)

    @pl.when(k == 0)
    def _init():
        acc_ref[...] = jnp.zeros_like(acc_ref)

    acc_ref[...] += jnp.dot(
        x_ref[...], w_ref[...], preferred_element_type=jnp.float32
    )

    @pl.when(k == pl.num_programs(1) - 1)
    def _finalize():
        # Bias add + numerically-stable log_softmax in f32.  Padded label
        # lanes carry -1e30: they never win the max and contribute exp()==0
        # to the logsumexp, so the softmax over the real labels is exact.
        logits = acc_ref[...] + b_ref[...]
        m = jnp.max(logits, axis=1, keepdims=True)
        shifted = logits - m
        lse = jnp.log(jnp.sum(jnp.exp(shifted), axis=1, keepdims=True))
        o_ref[...] = (shifted - lse).astype(o_ref.dtype)


def prepare_params(weight, bias, compute_dtype=jnp.bfloat16):
    """One-time (out of hot path) param prep.

    weight: (L, F) nn.Linear layout; bias: (L,).
    Returns:
      w_t:   (F, L_pad) pre-transposed, zero lane-padded, cast to
             `compute_dtype` (bf16 default -> MXU-native, half the bytes).
      b_pad: (1, L_pad) kept in f32; real labels = bias, pad lanes = -1e30.
    """
    L, F = weight.shape
    L_pad = max(_round_up(L, _LANE), _LANE)
    w_t = jnp.zeros((F, L_pad), dtype=compute_dtype)
    w_t = w_t.at[:, :L].set(weight.T.astype(compute_dtype))
    b_pad = jnp.full((1, L_pad), _NEG_BIG, dtype=jnp.float32)
    b_pad = b_pad.at[0, :L].set(bias.astype(jnp.float32))
    return w_t, b_pad


def _select_tiles(B, F, L_pad, x_bpe, w_bpe, vmem_budget):
    """Pick (TB, TK, n_w_buf, est_bytes) so the per-step working set fits."""
    out_bpe = 4

    def per_row(tk):
        # 2 x-buffers + 2 out-buffers + f32 accumulator scratch, per row.
        return 2 * tk * x_bpe + 2 * L_pad * out_bpe + L_pad * 4

    def fixed(tk, n_w_buf):
        return n_w_buf * tk * L_pad * w_bpe + _SUBLANE * L_pad * 4  # W + bias

    min_tb = min(256, _round_up(B, _SUBLANE))

    # --- K tile: keep the whole feature dim resident if it fits alongside a
    # reasonable batch tile; otherwise stream K in 128-aligned chunks.
    TK, n_w_buf = F, 1  # constant index_map -> single-buffered weight
    if fixed(F, 1) + min_tb * per_row(F) > vmem_budget:
        for cand in (2048, 1024, 512, 256, 128):
            if F % cand == 0 and F // cand >= 2:
                TK, n_w_buf = cand, 2  # W streamed along K -> double buffer
                break
        # TODO(synk): if F is huge but not a multiple of 128, zero-pad the
        # feature dim in the wrapper so the K axis can still be tiled.

    # --- Batch tile: target >= ~1 MiB of x per step (amortizes the ~0.35 us
    # grid-step overhead), capped by the VMEM budget and the padded batch.
    tb_target = max(256, -(-(1 << 20) // (TK * x_bpe)))
    tb_cap = max(_SUBLANE, (vmem_budget - fixed(TK, n_w_buf)) // per_row(TK))
    TB = max(_SUBLANE, min(tb_target, tb_cap, 8192))
    TB = (TB // _SUBLANE) * _SUBLANE

    B_up = _round_up(B, _SUBLANE)
    TB = min(TB, B_up)
    # v7x has 2 TensorCores: for non-trivial batches make sure the "parallel"
    # batch axis has >= 2 steps so both cores get work (free on v5e/v6e).
    if B_up >= 128 and TB >= B_up:
        TB = _round_up(-(-B_up // 2), _SUBLANE)

    est_bytes = fixed(TK, max(n_w_buf, 2)) + TB * per_row(TK)
    return TB, TK, n_w_buf, est_bytes


def logistic_regression_forward(x, w_t, b_pad, vmem_budget=None):
    """x: (B, F); w_t (F, L_pad) / b_pad (1, L_pad) from prepare_params.

    Returns the lane-padded (B, L_pad) f32 log-probabilities; the real labels
    occupy columns [:label_size].  Slicing the pad lanes off is left to the
    consumer so the hot path keeps only lane-dense unmasked stores.
    """
    B, F = x.shape
    F_w, L_pad = w_t.shape
    assert F_w == F, (F_w, F)

    x = x.astype(w_t.dtype)  # bf16 x stream: halves the dominant HBM traffic
    if vmem_budget is None:
        vmem_budget = _vmem_budget_bytes()

    x_bpe = x.dtype.itemsize
    w_bpe = w_t.dtype.itemsize
    TB, TK, n_w_buf, est_bytes = _select_tiles(B, F, L_pad, x_bpe, w_bpe, vmem_budget)
    vmem_limit = int(max(vmem_budget, est_bytes + (4 << 20)))

    n_b = pl.cdiv(B, TB)
    n_k = pl.cdiv(F, TK)

    cost = pl.CostEstimate(
        flops=2 * B * F * L_pad,
        transcendentals=B * L_pad + B,  # exp per logit + log per row
        bytes_accessed=int(
            x.size * x_bpe
            + w_t.size * w_bpe * (n_b if n_k > 1 else 1)
            + b_pad.size * 4
            + B * L_pad * 4
        ),
    )

    def _call(single_buffer_const):
        w_kwargs, b_kwargs = {}, {}
        if single_buffer_const and n_k == 1:
            # Constant index_map -> second pipeline buffer is pure VMEM waste.
            w_kwargs = dict(pipeline_mode=pl.Buffered(1))
            b_kwargs = dict(pipeline_mode=pl.Buffered(1))
        in_specs = [
            pl.BlockSpec((TB, TK), lambda i, k: (i, k)),                # x stream
            pl.BlockSpec((TK, L_pad), lambda i, k: (k, 0), **w_kwargs),  # weight
            pl.BlockSpec((1, L_pad), lambda i, k: (0, 0), **b_kwargs),   # bias
        ]
        return pl.pallas_call(
            _logreg_kernel,
            out_shape=jax.ShapeDtypeStruct((B, L_pad), jnp.float32),
            grid_spec=pltpu.PrefetchScalarGridSpec(
                num_scalar_prefetch=0,
                grid=(n_b, n_k),
                in_specs=in_specs,
                out_specs=pl.BlockSpec((TB, L_pad), lambda i, k: (i, 0)),
                scratch_shapes=[pltpu.VMEM((TB, L_pad), jnp.float32)],
            ),
            compiler_params=pltpu.CompilerParams(
                dimension_semantics=("parallel", "arbitrary"),
                vmem_limit_bytes=vmem_limit,
            ),
            cost_estimate=cost,
        )(x, w_t, b_pad)

    try:
        return _call(single_buffer_const=True)
    except Exception:
        # Pallas revision without pipeline_mode / Buffered(1) support:
        # fall back to default double-buffering (correct, slightly more VMEM).
        return _call(single_buffer_const=False)


if __name__ == "__main__":
    key = jax.random.PRNGKey(0)
    batch, feature_size, label_size = 8, 32, 16

    kx, kw, kb = jax.random.split(key, 3)
    x = jax.random.normal(kx, (batch, feature_size), dtype=jnp.float32)

    # Deterministic init matching nn.Linear default: U(-1/sqrt(F), 1/sqrt(F))
    bound = 1.0 / (feature_size ** 0.5)
    weight = jax.random.uniform(
        kw, (label_size, feature_size), minval=-bound, maxval=bound, dtype=jnp.float32
    )
    bias = jax.random.uniform(
        kb, (label_size,), minval=-bound, maxval=bound, dtype=jnp.float32
    )

    # One-time param prep (hoisted out of the per-forward hot path).
    w_t, b_pad = prepare_params(weight, bias)

    out_pad = logistic_regression_forward(x, w_t, b_pad)
    out_pad = jax.block_until_ready(out_pad)
    out = out_pad[:, :label_size]  # test-only slice (kept out of the hot path)

    # Reference 1: identical bf16-quantized operands, f32 math (tight tol).
    xq = x.astype(jnp.bfloat16).astype(jnp.float32)
    wq = weight.astype(jnp.bfloat16).astype(jnp.float32)
    ref_q = jax.nn.log_softmax(xq @ wq.T + bias, axis=1)
    # Reference 2: original full-f32 module semantics (bf16-input tolerance).
    ref_f32 = jax.nn.log_softmax(x @ weight.T + bias, axis=1)

    assert out.shape == (batch, label_size)
    assert jnp.allclose(out, ref_q, atol=1e-4, rtol=1e-4), float(
        jnp.max(jnp.abs(out - ref_q))
    )
    assert jnp.allclose(out, ref_f32, atol=5e-2, rtol=5e-2), float(
        jnp.max(jnp.abs(out - ref_f32))
    )

    print("KERNEL_OK")
</pallas_src>

<mosaic_0001>
module attributes {stable_mosaic.version = 11 : i64} {
  func.func @_logreg_kernel(%arg0: i32, %arg1: i32, %arg2: memref<8x32xbf16, #tpu.memory_space<vmem>>, %arg3: memref<32x128xbf16, #tpu.memory_space<vmem>>, %arg4: memref<1x128xf32, #tpu.memory_space<vmem>>, %arg5: memref<8x128xf32, #tpu.memory_space<vmem>>, %arg6: memref<8x128xf32, #tpu.memory_space<vmem>>) attributes {dimension_semantics = [#tpu.dimension_semantics<parallel>, #tpu.dimension_semantics<arbitrary>], iteration_bounds = array<i64: 1, 1>, scalar_prefetch = 0 : i64, scratch_operands = 1 : i64, tpu.core_type = #tpu.core_type<tc>, window_params = [{transform_indices = @transform_0, window_bounds = array<i64: 8, 32>}, {pipeline_mode = #tpu.pipeline_mode<synchronous>, transform_indices = @transform_1, window_bounds = array<i64: 32, 128>}, {pipeline_mode = #tpu.pipeline_mode<synchronous>, transform_indices = @transform_2, window_bounds = array<i64: 1, 128>}, {transform_indices = @transform_3, window_bounds = array<i64: 8, 128>}]} {
    %c0_i32 = arith.constant 0 : i32
    %0 = arith.cmpi eq, %arg1, %c0_i32 : i32
    %1 = arith.extui %0 : i1 to i32
    %c0_i32_0 = arith.constant 0 : i32
    %2 = arith.cmpi ne, %1, %c0_i32_0 : i32
    scf.if %2 {
      %cst_10 = arith.constant 0.000000e+00 : f32
      %12 = vector.broadcast %cst_10 : f32 to vector<8x128xf32>
      %c0_11 = arith.constant 0 : index
      %c0_12 = arith.constant 0 : index
      %13 = vector.load %arg6[%c0_11, %c0_12] : memref<8x128xf32, #tpu.memory_space<vmem>>, vector<8x128xf32>
      tpu.vector_store %arg6[%c0_11, %c0_12], %12 {strides = array<i32>} : memref<8x128xf32, #tpu.memory_space<vmem>>, vector<8x128xf32>,
    } else {
    }
    %c0 = arith.constant 0 : index
    %c0_1 = arith.constant 0 : index
    %3 = vector.load %arg6[%c0, %c0_1] : memref<8x128xf32, #tpu.memory_space<vmem>>, vector<8x128xf32>
    %c0_2 = arith.constant 0 : index
    %c0_3 = arith.constant 0 : index
    %4 = vector.load %arg2[%c0_2, %c0_3] : memref<8x32xbf16, #tpu.memory_space<vmem>>, vector<8x32xbf16>
    %c0_4 = arith.constant 0 : index
    %c0_5 = arith.constant 0 : index
    %5 = vector.load %arg3[%c0_4, %c0_5] : memref<32x128xbf16, #tpu.memory_space<vmem>>, vector<32x128xbf16>
    %cst = arith.constant dense<0.000000e+00> : vector<8x128xf32>
    %6 = tpu.matmul %4, %5, %cst {dimension_numbers = #tpu.dot_dimension_numbers<[1], [0], [0], [1], [0, 0, 1, 1], [], []>} : vector<8x32xbf16>, vector<32x128xbf16>, vector<8x128xf32> -> vector<8x128xf32>
    %7 = arith.addf %3, %6 : vector<8x128xf32>
    %c0_6 = arith.constant 0 : index
    %c0_7 = arith.constant 0 : index
    %8 = vector.load %arg6[%c0_6, %c0_7] : memref<8x128xf32, #tpu.memory_space<vmem>>, vector<8x128xf32>
    tpu.vector_store %arg6[%c0_6, %c0_7], %7 {strides = array<i32>} : memref<8x128xf32, #tpu.memory_space<vmem>>, vector<8x128xf32>,
    %c0_i32_8 = arith.constant 0 : i32
    %9 = arith.cmpi eq, %arg1, %c0_i32_8 : i32
    %10 = arith.extui %9 : i1 to i32
    %c0_i32_9 = arith.constant 0 : i32
    %11 = arith.cmpi ne, %10, %c0_i32_9 : i32
    scf.if %11 {
      %c0_10 = arith.constant 0 : index
      %c0_11 = arith.constant 0 : index
      %12 = vector.load %arg6[%c0_10, %c0_11] : memref<8x128xf32, #tpu.memory_space<vmem>>, vector<8x128xf32>
      %c0_12 = arith.constant 0 : index
      %c0_13 = arith.constant 0 : index
      %13 = vector.load %arg4[%c0_12, %c0_13] : memref<1x128xf32, #tpu.memory_space<vmem>>, vector<1x128xf32>
      %14 = vector.broadcast %13 : vector<1x128xf32> to vector<8x128xf32>
      %15 = arith.addf %12, %14 : vector<8x128xf32>
      %cst_14 = arith.constant dense<0xFF800000> : vector<8xf32>
      %16 = vector.multi_reduction <maximumf>, %15, %cst_14 [1] : vector<8x128xf32> to vector<8xf32>
      %17 = vector.shape_cast %16 : vector<8xf32> to vector<8x1xf32>
      %18 = vector.broadcast %17 : vector<8x1xf32> to vector<8x128xf32>
      %19 = arith.subf %15, %18 : vector<8x128xf32>
      %20 = math.exp %19 : vector<8x128xf32>
      %cst_15 = arith.constant dense<0.000000e+00> : vector<8xf32>
      %21 = vector.multi_reduction <add>, %20, %cst_15 [1] : vector<8x128xf32> to vector<8xf32>
      %22 = vector.shape_cast %21 : vector<8xf32> to vector<8x1xf32>
      %23 = math.log %22 : vector<8x1xf32>
      %24 = vector.broadcast %23 : vector<8x1xf32> to vector<8x128xf32>
      %25 = arith.subf %19, %24 : vector<8x128xf32>
      %c0_16 = arith.constant 0 : index
      %c0_17 = arith.constant 0 : index
      %26 = vector.load %arg5[%c0_16, %c0_17] : memref<8x128xf32, #tpu.memory_space<vmem>>, vector<8x128xf32>
      tpu.vector_store %arg5[%c0_16, %c0_17], %25 {strides = array<i32>} : memref<8x128xf32, #tpu.memory_space<vmem>>, vector<8x128xf32>,
    } else {
    }
    return
  }
  func.func @transform_0(%arg0: i32, %arg1: i32) -> (i32, i32) {
    %c0_i32 = arith.constant 0 : i32
    return %arg0, %arg1 : i32, i32
  }
  func.func @transform_1(%arg0: i32, %arg1: i32) -> (i32, i32) {
    %c0_i32 = arith.constant 0 : i32
    %c0_i32_0 = arith.constant 0 : i32
    return %arg1, %c0_i32 : i32, i32
  }
  func.func @transform_2(%arg0: i32, %arg1: i32) -> (i32, i32) {
    %c0_i32 = arith.constant 0 : i32
    %c0_i32_0 = arith.constant 0 : i32
    %c0_i32_1 = arith.constant 0 : i32
    return %c0_i32, %c0_i32_0 : i32, i32
  }
  func.func @transform_3(%arg0: i32, %arg1: i32) -> (i32, i32) {
    %c0_i32 = arith.constant 0 : i32
    %c0_i32_0 = arith.constant 0 : i32
    return %arg0, %c0_i32 : i32, i32
  }
}

module attributes {stable_mosaic.version = 11 : i64} {
  func.func @_logreg_kernel(%arg0: i32, %arg1: i32, %arg2: memref<8x32xbf16, #tpu.memory_space<vmem>>, %arg3: memref<32x128xbf16, #tpu.memory_space<vmem>>, %arg4: memref<1x128xf32, #tpu.memory_space<vmem>>, %arg5: memref<8x128xf32, #tpu.memory_space<vmem>>, %arg6: memref<8x128xf32, #tpu.memory_space<vmem>>) attributes {dimension_semantics = [#tpu.dimension_semantics<parallel>, #tpu.dimension_semantics<arbitrary>], iteration_bounds = array<i64: 1, 1>, scalar_prefetch = 0 : i64, scratch_operands = 1 : i64, tpu.core_type = #tpu.core_type<tc>, window_params = [{transform_indices = @transform_0, window_bounds = array<i64: 8, 32>}, {transform_indices = @transform_1, window_bounds = array<i64: 32, 128>}, {pipeline_mode = #tpu.pipeline_mode<synchronous>, transform_indices = @transform_2, window_bounds = array<i64: 1, 128>}, {transform_indices = @transform_3, window_bounds = array<i64: 8, 128>}]} {
    %c0_i32 = arith.constant 0 : i32
    %0 = arith.cmpi eq, %arg1, %c0_i32 : i32
    %1 = arith.extui %0 : i1 to i32
    %c0_i32_0 = arith.constant 0 : i32
    %2 = arith.cmpi ne, %1, %c0_i32_0 : i32
    scf.if %2 {
      %cst_10 = arith.constant 0.000000e+00 : f32
      %12 = vector.broadcast %cst_10 : f32 to vector<8x128xf32>
      %c0_11 = arith.constant 0 : index
      %c0_12 = arith.constant 0 : index
      %13 = vector.load %arg6[%c0_11, %c0_12] : memref<8x128xf32, #tpu.memory_space<vmem>>, vector<8x128xf32>
      tpu.vector_store %arg6[%c0_11, %c0_12], %12 {strides = array<i32>} : memref<8x128xf32, #tpu.memory_space<vmem>>, vector<8x128xf32>,
    } else {
    }
    %c0 = arith.constant 0 : index
    %c0_1 = arith.constant 0 : index
    %3 = vector.load %arg6[%c0, %c0_1] : memref<8x128xf32, #tpu.memory_space<vmem>>, vector<8x128xf32>
    %c0_2 = arith.constant 0 : index
    %c0_3 = arith.constant 0 : index
    %4 = vector.load %arg2[%c0_2, %c0_3] : memref<8x32xbf16, #tpu.memory_space<vmem>>, vector<8x32xbf16>
    %c0_4 = arith.constant 0 : index
    %c0_5 = arith.constant 0 : index
    %5 = vector.load %arg3[%c0_4, %c0_5] : memref<32x128xbf16, #tpu.memory_space<vmem>>, vector<32x128xbf16>
    %cst = arith.constant dense<0.000000e+00> : vector<8x128xf32>
    %6 = tpu.matmul %4, %5, %cst {dimension_numbers = #tpu.dot_dimension_numbers<[1], [0], [0], [1], [0, 0, 1, 1], [], []>} : vector<8x32xbf16>, vector<32x128xbf16>, vector<8x128xf32> -> vector<8x128xf32>
    %7 = arith.addf %3, %6 : vector<8x128xf32>
    %c0_6 = arith.constant 0 : index
    %c0_7 = arith.constant 0 : index
    %8 = vector.load %arg6[%c0_6, %c0_7] : memref<8x128xf32, #tpu.memory_space<vmem>>, vector<8x128xf32>
    tpu.vector_store %arg6[%c0_6, %c0_7], %7 {strides = array<i32>} : memref<8x128xf32, #tpu.memory_space<vmem>>, vector<8x128xf32>,
    %c0_i32_8 = arith.constant 0 : i32
    %9 = arith.cmpi eq, %arg1, %c0_i32_8 : i32
    %10 = arith.extui %9 : i1 to i32
    %c0_i32_9 = arith.constant 0 : i32
    %11 = arith.cmpi ne, %10, %c0_i32_9 : i32
    scf.if %11 {
      %c0_10 = arith.constant 0 : index
      %c0_11 = arith.constant 0 : index
      %12 = vector.load %arg6[%c0_10, %c0_11] : memref<8x128xf32, #tpu.memory_space<vmem>>, vector<8x128xf32>
      %c0_12 = arith.constant 0 : index
      %c0_13 = arith.constant 0 : index
      %13 = vector.load %arg4[%c0_12, %c0_13] : memref<1x128xf32, #tpu.memory_space<vmem>>, vector<1x128xf32>
      %14 = vector.broadcast %13 : vector<1x128xf32> to vector<8x128xf32>
      %15 = arith.addf %12, %14 : vector<8x128xf32>
      %cst_14 = arith.constant dense<0xFF800000> : vector<8xf32>
      %16 = vector.multi_reduction <maximumf>, %15, %cst_14 [1] : vector<8x128xf32> to vector<8xf32>
      %17 = vector.shape_cast %16 : vector<8xf32> to vector<8x1xf32>
      %18 = vector.broadcast %17 : vector<8x1xf32> to vector<8x128xf32>
      %19 = arith.subf %15, %18 : vector<8x128xf32>
      %20 = math.exp %19 : vector<8x128xf32>
      %cst_15 = arith.constant dense<0.000000e+00> : vector<8xf32>
      %21 = vector.multi_reduction <add>, %20, %cst_15 [1] : vector<8x128xf32> to vector<8xf32>
      %22 = vector.shape_cast %21 : vector<8xf32> to vector<8x1xf32>
      %23 = math.log %22 : vector<8x1xf32>
      %24 = vector.broadcast %23 : vector<8x1xf32> to vector<8x128xf32>
      %25 = arith.subf %19, %24 : vector<8x128xf32>
      %c0_16 = arith.constant 0 : index
      %c0_17 = arith.constant 0 : index
      %26 = vector.load %arg5[%c0_16, %c0_17] : memref<8x128xf32, #tpu.memory_space<vmem>>, vector<8x128xf32>
      tpu.vector_store %arg5[%c0_16, %c0_17], %25 {strides = array<i32>} : memref<8x128xf32, #tpu.memory_space<vmem>>, vector<8x128xf32>,
    } else {
    }
    return
  }
  func.func @transform_0(%arg0: i32, %arg1: i32) -> (i32, i32) {
    %c0_i32 = arith.constant 0 : i32
    return %arg0, %arg1 : i32, i32
  }
  func.func @transform_1(%arg0: i32, %arg1: i32) -> (i32, i32) {
    %c0_i32 = arith.constant 0 : i32
    %c0_i32_0 = arith.constant 0 : i32
    return %arg1, %c0_i32 : i32, i32
  }
  func.func @transform_2(%arg0: i32, %arg1: i32) -> (i32, i32) {
    %c0_i32 = arith.constant 0 : i32
    %c0_i32_0 = arith.constant 0 : i32
    %c0_i32_1 = arith.constant 0 : i32
    return %c0_i32, %c0_i32_0 : i32, i32
  }
  func.func @transform_3(%arg0: i32, %arg1: i32) -> (i32, i32) {
    %c0_i32 = arith.constant 0 : i32
    %c0_i32_0 = arith.constant 0 : i32
    return %arg0, %c0_i32 : i32, i32
  }
}

</mosaic_0001>

<bundles_post_ra>
// kernel: tpu_custom_call.1
= control target key start
LH: loop header
LB: loop body
LE: loop exit
PB: predicated region body
PF: predicated region fallthrough
CT: control target
= control target key end

     0   :  { %8 = vsyncpa [#allocation4], 0  ;;  %s262_s0 = inlined_call_operand.hbm [shape: bf16[8,32], index: 0, kind: input, shape index: {}]   ;;  %s263_s1 = inlined_call_operand.hbm [shape: bf16[32,128], index: 1, kind: input, shape index: {}]   ;;  %s264_s2 = inlined_call_operand.vmem [shape: f32[1,128], index: 2, kind: input, shape index: {}]   ;;  %s265_s3 = inlined_call_operand.hbm [shape: f32[8,128], index: 3, kind: output, shape index: {}]  }
   0x1   :  { %9 = vsyncpa [#allocation7], 0 }
   0x2   :  { %10 = vsyncpa [#allocation5], 0  ;;  %s16_s14 = sshll.u32 %s262_s0, 4  ;;  %s225_s15 = smov [#allocation3]   ;;  %s17_s14 = int_to_ptr.hbm [resolvable:$true] %s16_s14 }
   0x3   :  { %s18_s16 = sshll.u32 %s225_s15, 4  ;;  %s26_s19 = sshll.u32 %s263_s1, 4  ;;  %s19_s16 = int_to_ptr.vmem [resolvable:$true] %s18_s16  ;;  %s27_s19 = int_to_ptr.hbm [resolvable:$true] %s26_s19 }
   0x4   :  { %21 = dma.hbm_to_vmem [thread:$0]  %s17_s14, 64, %s19_s16, [#allocation4]  }
   0x5   :  { %s226_s20 = smov [#allocation6]   ;;  %s227_s22 = smov 64  }
   0x6   :  { %s28_s21 = sshll.u32 %s226_s20, 4  ;;  %s228_s23 = smov 4   ;;  %s29_s21 = int_to_ptr.vmem [resolvable:$true] %s28_s21 }
   0x7   :  { %34 = dma.hbm_to_vmem [thread:$0]  %s27_s19, 256, %s29_s21, [#allocation7], %s227_s22, %s227_s22, %s228_s23  }
   0x8   :  { %219 = dma.done.wait [#allocation4], 64  }
   0x9   :  { %220 = vsyncadd [#allocation4], 4294967232 }
   0xa   :  { %221 = dma.done.wait [#allocation7], 256  }
   0xb   :  { %222 = vsyncadd [#allocation7], 4294967040  ;;  %v136_v0 = vld [vmem:[#allocation6 + $0x8] sm:$0xff]  ;;  %v135_v1 = vld [vmem:[#allocation6] sm:$0xff]  ;;  %vm69_vm0 = vcmask 261120   ;;  %s229_s24 = smov [#allocation8]  }
   0xc   :  { %79 = vmatpush.bf16.msra.mxu0 %v136_v0  ;;  %v52_v2 = vld [vmem:[#allocation3] sm:$0xf]  ;;  %s113_s25 = sshll.u32 %s229_s24, 4  ;;  %s115_s28 = sshll.u32 %s265_s3, 4  ;;  %s114_s25 = int_to_ptr.vmem [resolvable:$true] %s113_s25  ;;  %s116_s28 = int_to_ptr.hbm [resolvable:$true] %s115_s28 }
   0xd   :  { %v142_v3 = vld [vmem:[%s264_s2] ss:$0 sm:$0xff] }
  0x10   :  { %80 = vmatpush.bf16.msra.mxu0 %v135_v1 }
  0x13   :  { %134 = vmatmul.msk.bf16.vlgmr.msra.gmra.mxu0 %vm69_vm0, %v52_v2 }
  0x90   :  { %v82_v4 = vpop.f32.mrf.mxu0 }
  0x91   :  { %v96_v5 = vadd.f32 %v142_v3, %v82_v4 }
  0x93   :  { %97 = vmax.xlane.f32.xlu0 %v96_v5 }
  0x98   :  { %v84_v6 = vpop.f32.mrf.mxu0 }
 0x106   :  { %v98_v7 = vpop.xlane.xlu0 %97 }
 0x107   :  { %v99_v8 = vsub.f32 %v96_v5, %v98_v7 }
 0x109   :  { %v100_v9 = vmul.f32 1.442695, %v99_v8 }
 0x10b   :  { %143 = vpow2.f32 %v100_v9 }
 0x111   :  { %v144_v10 = vpop.eup %143 }
 0x112   :  { %102 = vadd.xlane.f32.xlu0 %v144_v10 }
 0x185   :  { %v103_v11 = vpop.xlane.xlu0 %102 }
 0x186   :  { %145 = vlog2.f32 %v103_v11 }
 0x18c   :  { %v146_v12 = vpop.eup %145 }
 0x18d   :  { %v105_v13 = vmul.f32 0.6931472, %v146_v12 }
 0x18f   :  { %v106_v14 = vsub.f32 %v99_v8, %v105_v13 }
 0x191   :  { %107 = vst [vmem:[#allocation8] sm:$0xff] %v106_v14 }
 0x192   :  { %118 = dma.vmem_to_hbm [thread:$0]  %s114_s25, 128, %s116_s28, [#allocation5]  }
 0x193   :  { %223 = dma.done.wait [#allocation5], 128  }
 0x194   :  { %224 = vsyncadd [#allocation5], 4294967168 }
 0x195   :  { %123 = vsyncpa [#allocation4], 1 }
 0x196   :  { %124 = vsyncpa [#allocation7], 1 }
 0x197   :  { %125 = vsyncpa [#allocation5], 1 }

// kernel: tpu_custom_call.1
= control target key start
LH: loop header
LB: loop body
LE: loop exit
PB: predicated region body
PF: predicated region fallthrough
CT: control target
= control target key end

     0   :  { %8 = vsyncpa [#allocation4], 0  ;;  %s262_s0 = inlined_call_operand.hbm [shape: bf16[8,32], index: 0, kind: input, shape index: {}]   ;;  %s263_s1 = inlined_call_operand.hbm [shape: bf16[32,128], index: 1, kind: input, shape index: {}]   ;;  %s264_s2 = inlined_call_operand.vmem [shape: f32[1,128], index: 2, kind: input, shape index: {}]   ;;  %s265_s3 = inlined_call_operand.hbm [shape: f32[8,128], index: 3, kind: output, shape index: {}]  }
   0x1   :  { %9 = vsyncpa [#allocation7], 0 }
   0x2   :  { %10 = vsyncpa [#allocation5], 0  ;;  %s16_s14 = sshll.u32 %s262_s0, 4  ;;  %s225_s15 = smov [#allocation3]   ;;  %s17_s14 = int_to_ptr.hbm [resolvable:$true] %s16_s14 }
   0x3   :  { %s18_s16 = sshll.u32 %s225_s15, 4  ;;  %s26_s19 = sshll.u32 %s263_s1, 4  ;;  %s19_s16 = int_to_ptr.vmem [resolvable:$true] %s18_s16  ;;  %s27_s19 = int_to_ptr.hbm [resolvable:$true] %s26_s19 }
   0x4   :  { %21 = dma.hbm_to_vmem [thread:$0]  %s17_s14, 64, %s19_s16, [#allocation4]  }
   0x5   :  { %s226_s20 = smov [#allocation6]   ;;  %s227_s22 = smov 64  }
   0x6   :  { %s28_s21 = sshll.u32 %s226_s20, 4  ;;  %s228_s23 = smov 4   ;;  %s29_s21 = int_to_ptr.vmem [resolvable:$true] %s28_s21 }
   0x7   :  { %34 = dma.hbm_to_vmem [thread:$0]  %s27_s19, 256, %s29_s21, [#allocation7], %s227_s22, %s227_s22, %s228_s23  }
   0x8   :  { %219 = dma.done.wait [#allocation4], 64  }
   0x9   :  { %220 = vsyncadd [#allocation4], 4294967232 }
   0xa   :  { %221 = dma.done.wait [#allocation7], 256  }
   0xb   :  { %222 = vsyncadd [#allocation7], 4294967040  ;;  %v136_v0 = vld [vmem:[#allocation6 + $0x8] sm:$0xff]  ;;  %v135_v1 = vld [vmem:[#allocation6] sm:$0xff]  ;;  %vm69_vm0 = vcmask 261120   ;;  %s229_s24 = smov [#allocation8]  }
   0xc   :  { %79 = vmatpush.bf16.msra.mxu0 %v136_v0  ;;  %v52_v2 = vld [vmem:[#allocation3] sm:$0xf]  ;;  %s113_s25 = sshll.u32 %s229_s24, 4  ;;  %s115_s28 = sshll.u32 %s265_s3, 4  ;;  %s114_s25 = int_to_ptr.vmem [resolvable:$true] %s113_s25  ;;  %s116_s28 = int_to_ptr.hbm [resolvable:$true] %s115_s28 }
   0xd   :  { %v142_v3 = vld [vmem:[%s264_s2] ss:$0 sm:$0xff] }
  0x10   :  { %80 = vmatpush.bf16.msra.mxu0 %v135_v1 }
  0x13   :  { %134 = vmatmul.msk.bf16.vlgmr.msra.gmra.mxu0 %vm69_vm0, %v52_v2 }
  0x90   :  { %v82_v4 = vpop.f32.mrf.mxu0 }
  0x91   :  { %v96_v5 = vadd.f32 %v142_v3, %v82_v4 }
  0x93   :  { %97 = vmax.xlane.f32.xlu0 %v96_v5 }
  0x98   :  { %v84_v6 = vpop.f32.mrf.mxu0 }
 0x106   :  { %v98_v7 = vpop.xlane.xlu0 %97 }
 0x107   :  { %v99_v8 = vsub.f32 %v96_v5, %v98_v7 }
 0x109   :  { %v100_v9 = vmul.f32 1.442695, %v99_v8 }
 0x10b   :  { %143 = vpow2.f32 %v100_v9 }
 0x111   :  { %v144_v10 = vpop.eup %143 }
 0x112   :  { %102 = vadd.xlane.f32.xlu0 %v144_v10 }
 0x185   :  { %v103_v11 = vpop.xlane.xlu0 %102 }
 0x186   :  { %145 = vlog2.f32 %v103_v11 }
 0x18c   :  { %v146_v12 = vpop.eup %145 }
 0x18d   :  { %v105_v13 = vmul.f32 0.6931472, %v146_v12 }
 0x18f   :  { %v106_v14 = vsub.f32 %v99_v8, %v105_v13 }
 0x191   :  { %107 = vst [vmem:[#allocation8] sm:$0xff] %v106_v14 }
 0x192   :  { %118 = dma.vmem_to_hbm [thread:$0]  %s114_s25, 128, %s116_s28, [#allocation5]  }
 0x193   :  { %223 = dma.done.wait [#allocation5], 128  }
 0x194   :  { %224 = vsyncadd [#allocation5], 4294967168 }
 0x195   :  { %123 = vsyncpa [#allocation4], 1 }
 0x196   :  { %124 = vsyncpa [#allocation7], 1 }
 0x197   :  { %125 = vsyncpa [#allocation5], 1 }

</bundles_post_ra>
